<compile_context>
chip_gen: v7x
topology: tpu7x:2x2x1
jax: 0.10.0
libtpu: 0.0.40
codegen_flags: <defaults>
</compile_context>

<pallas_src>
import jax
import jax.numpy as jnp
from jax import lax
from jax.experimental import pallas as pl
from jax.experimental.pallas import tpu as pltpu


def _make_conv_block_kernel(eps):
    def kernel(p_ref, w_ref, o_ref):
        # p_ref: (1, HW, K)      im2col patches for one sample (K = KH*KW*C_in)
        # w_ref: (K, C_pad)      flattened conv weights, zero-padded to 128 lanes
        # o_ref: (1, HW, C_pad)  lane-dense output block
        p = p_ref[0]                                   # (HW, K)

        # Single MXU dot: implicit im2col conv.
        acc = jnp.dot(p, w_ref[...],
                      preferred_element_type=jnp.float32)  # (HW, C_pad)

        # InstanceNorm2d (affine=False, biased variance, eps):
        # per-channel statistics over the spatial axis of this sample.
        mean = jnp.mean(acc, axis=0, keepdims=True)        # (1, C_pad)
        diff = acc - mean
        var = jnp.mean(diff * diff, axis=0, keepdims=True)  # (1, C_pad)
        y = diff * lax.rsqrt(var + eps)

        # ReLU
        y = jnp.maximum(y, 0.0)

        o_ref[0] = y.astype(o_ref.dtype)

    return kernel


def conv_block_forward(x_nchw, weight, bias, *, stride=1, padding=1, eps=1e-5):
    """Fused Conv2d(reflect) + InstanceNorm2d + ReLU.

    x_nchw: (N, C_in, H, W); weight: (C_out, C_in, KH, KW); bias: (C_out,).
    NOTE: `bias` is accepted for API parity but intentionally NOT applied:
    InstanceNorm (affine=False) subtracts the per-channel mean, so a
    per-channel conv bias cancels exactly.
    """
    del bias  # cancels under instance normalization
    N, C_in, H, W = x_nchw.shape
    C_out, _, KH, KW = weight.shape

    # ---- plain-JAX layout plumbing (reflect pad + im2col + weight packing) ----
    x_pad = jnp.pad(
        x_nchw, ((0, 0), (0, 0), (padding, padding), (padding, padding)),
        mode="reflect")
    x_nhwc = jnp.transpose(x_pad, (0, 2, 3, 1))            # (N, Hp, Wp, C_in)

    Hp, Wp = H + 2 * padding, W + 2 * padding
    H_out = (Hp - KH) // stride + 1
    W_out = (Wp - KW) // stride + 1
    HW = H_out * W_out
    K = KH * KW * C_in

    h_span = (H_out - 1) * stride + 1
    w_span = (W_out - 1) * stride + 1
    taps = []
    for kh in range(KH):
        for kw in range(KW):
            taps.append(
                x_nhwc[:, kh:kh + h_span:stride, kw:kw + w_span:stride, :])
    # (N, H_out, W_out, KH*KW*C_in) -> (N, HW, K); tap order = (kh, kw, c)
    patches = jnp.concatenate(taps, axis=-1).reshape(N, HW, K)

    # Weights: (C_out, C_in, KH, KW) -> (KH, KW, C_in, C_out) -> (K, C_out),
    # then zero-pad channels to a lane-dense multiple of 128.
    C_pad = max(128, ((C_out + 127) // 128) * 128)
    w_flat = jnp.transpose(weight, (2, 3, 1, 0)).reshape(K, C_out)
    w_flat = jnp.pad(w_flat, ((0, 0), (0, C_pad - C_out)))

    kernel = _make_conv_block_kernel(eps)

    out_flat = pl.pallas_call(
        kernel,
        out_shape=jax.ShapeDtypeStruct((N, HW, C_pad), x_nchw.dtype),
        grid_spec=pltpu.PrefetchScalarGridSpec(
            num_scalar_prefetch=0,
            grid=(N,),
            in_specs=[
                pl.BlockSpec((1, HW, K), lambda n: (n, 0, 0)),
                pl.BlockSpec((K, C_pad), lambda n: (0, 0)),
            ],
            out_specs=pl.BlockSpec((1, HW, C_pad), lambda n: (n, 0, 0)),
        ),
        compiler_params=pltpu.CompilerParams(
            dimension_semantics=("parallel",)),
    )(patches, w_flat)

    # Slice off padded channels and return to NCHW.
    out = out_flat[:, :, :C_out].reshape(N, H_out, W_out, C_out)
    return jnp.transpose(out, (0, 3, 1, 2))


def _reference(x_nchw, weight, bias, *, stride=1, padding=1, eps=1e-5):
    """Pure-JAX reference mirroring the PyTorch module (bias included)."""
    x_pad = jnp.pad(
        x_nchw, ((0, 0), (0, 0), (padding, padding), (padding, padding)),
        mode="reflect")
    y = lax.conv_general_dilated(
        x_pad, weight, window_strides=(stride, stride), padding="VALID",
        dimension_numbers=("NCHW", "OIHW", "NCHW"))
    y = y + bias.reshape(1, -1, 1, 1)
    mean = jnp.mean(y, axis=(2, 3), keepdims=True)
    var = jnp.mean((y - mean) ** 2, axis=(2, 3), keepdims=True)
    y = (y - mean) / jnp.sqrt(var + eps)
    return jnp.maximum(y, 0.0)


if __name__ == "__main__":
    # ConvBlock(in_channels=4, out_channels=8, kernel_size=3, stride=1, padding=1)
    N, C_in, H, W = 2, 4, 16, 16
    C_out, KH, KW = 8, 3, 3
    stride, padding = 1, 1

    key = jax.random.PRNGKey(0)
    kx, kw, kb = jax.random.split(key, 3)
    x = jax.random.normal(kx, (N, C_in, H, W), dtype=jnp.float32)
    weight = jax.random.normal(kw, (C_out, C_in, KH, KW), dtype=jnp.float32) * 0.1
    bias = jax.random.normal(kb, (C_out,), dtype=jnp.float32) * 0.1

    out = conv_block_forward(x, weight, bias, stride=stride, padding=padding)
    out = jax.block_until_ready(out)

    ref = _reference(x, weight, bias, stride=stride, padding=padding)
    assert out.shape == (N, C_out, H, W)
    assert jnp.allclose(out, ref, atol=1e-4, rtol=1e-4), "mismatch vs reference"

    print("KERNEL_OK")
</pallas_src>

<mosaic_0001>
module attributes {stable_mosaic.version = 11 : i64} {
  func.func @kernel(%arg0: i32, %arg1: memref<1x256x36xf32, #tpu.memory_space<vmem>>, %arg2: memref<36x128xf32, #tpu.memory_space<vmem>>, %arg3: memref<1x256x128xf32, #tpu.memory_space<vmem>>) attributes {dimension_semantics = [#tpu.dimension_semantics<parallel>], iteration_bounds = array<i64: 2>, scalar_prefetch = 0 : i64, scratch_operands = 0 : i64, tpu.core_type = #tpu.core_type<tc>, window_params = [{transform_indices = @transform_0, window_bounds = array<i64: 1, 256, 36>}, {pipeline_mode = #tpu.pipeline_mode<synchronous>, transform_indices = @transform_1, window_bounds = array<i64: 36, 128>}, {transform_indices = @transform_2, window_bounds = array<i64: 1, 256, 128>}]} {
    %c0 = arith.constant 0 : index
    %c0_0 = arith.constant 0 : index
    %c0_1 = arith.constant 0 : index
    %0 = vector.load %arg1[%c0, %c0_0, %c0_1] : memref<1x256x36xf32, #tpu.memory_space<vmem>>, vector<1x256x36xf32>
    %1 = vector.shape_cast %0 : vector<1x256x36xf32> to vector<256x36xf32>
    %c0_2 = arith.constant 0 : index
    %c0_3 = arith.constant 0 : index
    %2 = vector.load %arg2[%c0_2, %c0_3] : memref<36x128xf32, #tpu.memory_space<vmem>>, vector<36x128xf32>
    %cst = arith.constant dense<0.000000e+00> : vector<256x128xf32>
    %3 = tpu.matmul %1, %2, %cst {dimension_numbers = #tpu.dot_dimension_numbers<[1], [0], [0], [1], [0, 0, 1, 1], [], []>} : vector<256x36xf32>, vector<36x128xf32>, vector<256x128xf32> -> vector<256x128xf32>
    %cst_4 = arith.constant dense<0.000000e+00> : vector<128xf32>
    %4 = vector.multi_reduction <add>, %3, %cst_4 [0] : vector<256x128xf32> to vector<128xf32>
    %5 = vector.shape_cast %4 : vector<128xf32> to vector<1x128xf32>
    %cst_5 = arith.constant 2.560000e+02 : f32
    %6 = vector.broadcast %cst_5 : f32 to vector<1x128xf32>
    %7 = arith.divf %5, %6 : vector<1x128xf32>
    %8 = vector.broadcast %7 : vector<1x128xf32> to vector<256x128xf32>
    %9 = arith.subf %3, %8 : vector<256x128xf32>
    %10 = arith.mulf %9, %9 : vector<256x128xf32>
    %cst_6 = arith.constant dense<0.000000e+00> : vector<128xf32>
    %11 = vector.multi_reduction <add>, %10, %cst_6 [0] : vector<256x128xf32> to vector<128xf32>
    %12 = vector.shape_cast %11 : vector<128xf32> to vector<1x128xf32>
    %cst_7 = arith.constant 2.560000e+02 : f32
    %13 = vector.broadcast %cst_7 : f32 to vector<1x128xf32>
    %14 = arith.divf %12, %13 : vector<1x128xf32>
    %cst_8 = arith.constant 9.99999974E-6 : f32
    %15 = vector.broadcast %cst_8 : f32 to vector<1x128xf32>
    %16 = arith.addf %14, %15 : vector<1x128xf32>
    %17 = math.rsqrt %16 : vector<1x128xf32>
    %18 = vector.broadcast %17 : vector<1x128xf32> to vector<256x128xf32>
    %19 = arith.mulf %9, %18 : vector<256x128xf32>
    %cst_9 = arith.constant 0.000000e+00 : f32
    %20 = vector.broadcast %cst_9 : f32 to vector<256x128xf32>
    %21 = arith.maximumf %19, %20 : vector<256x128xf32>
    %c0_10 = arith.constant 0 : index
    %c0_11 = arith.constant 0 : index
    %c0_12 = arith.constant 0 : index
    %22 = vector.load %arg3[%c0_10, %c0_11, %c0_12] : memref<1x256x128xf32, #tpu.memory_space<vmem>>, vector<1x256x128xf32>
    %23 = vector.shape_cast %22 : vector<1x256x128xf32> to vector<256x128xf32>
    %24 = vector.shape_cast %21 : vector<256x128xf32> to vector<1x256x128xf32>
    tpu.vector_store %arg3[%c0_10, %c0_11, %c0_12], %24 {strides = array<i32>} : memref<1x256x128xf32, #tpu.memory_space<vmem>>, vector<1x256x128xf32>,
    return
  }
  func.func @transform_0(%arg0: i32) -> (i32, i32, i32) {
    %c0_i32 = arith.constant 0 : i32
    %c0_i32_0 = arith.constant 0 : i32
    %c0_i32_1 = arith.constant 0 : i32
    return %arg0, %c0_i32, %c0_i32_0 : i32, i32, i32
  }
  func.func @transform_1(%arg0: i32) -> (i32, i32) {
    %c0_i32 = arith.constant 0 : i32
    %c0_i32_0 = arith.constant 0 : i32
    %c0_i32_1 = arith.constant 0 : i32
    return %c0_i32, %c0_i32_0 : i32, i32
  }
  func.func @transform_2(%arg0: i32) -> (i32, i32, i32) {
    %c0_i32 = arith.constant 0 : i32
    %c0_i32_0 = arith.constant 0 : i32
    %c0_i32_1 = arith.constant 0 : i32
    return %arg0, %c0_i32, %c0_i32_0 : i32, i32, i32
  }
}

</mosaic_0001>

<bundles_post_ra>
// kernel: tpu_custom_call.1
= control target key start
LH: loop header
LB: loop body
LE: loop exit
PB: predicated region body
PF: predicated region fallthrough
CT: control target
= control target key end

     0   :  { %7 = vsyncpa [#allocation3], 0  ;;  %s1588_s0 = inlined_call_operand.vmem [shape: f32[2,256,36], index: 0, kind: input, shape index: {}]   ;;  %s1589_s1 = inlined_call_operand.vmem [shape: f32[36,128], index: 1, kind: input, shape index: {}]   ;;  %s1590_s2 = inlined_call_operand.hbm [shape: f32[2,256,128], index: 2, kind: output, shape index: {}]  }
   0x1   :  { %9 = vsyncpa [#allocation3 + $0x1], 0  ;;  %s1101_s9 = smov 0   ;;  %s1103_s10 = smov 0  }
   0x2   :  { %s1105_s11 = smov 0   ;;  %s1107_s12 = smov 0  }
   0x3 LB: > { %s1122_s13 = sadd.s32 4294967295, %s1081_s12   ;;  %s820_s14 = sadd.s32 4294967294, %s1081_s12   ;;  %s1081_s12 = sphi %s1107_s12, %s1596_s12   ;;  %s1077_s11 = sphi %s1105_s11, %s1595_s11   ;;  %s1073_s10 = sphi %s1103_s10, %s1594_s10   ;;  %s1069_s9 = sphi %s1101_s9, %s1593_s9  }
   0x4   : > { %s1126_s15 = sadd.s32 1, %s1081_s12   ;;  %s69_s16 = sadd.s32 1, %s1077_s11 }
   0x5   : > { %s66_s17 = ssub.s32 %s1081_s12, %s1126_s15  ;;  %p79_p0 = scmp.ne.s32.totalorder %s1077_s11, %s1073_s10 }
   0x6   : > { %p67_p1 = scmp.eq.s32.totalorder %s66_s17, 0  ;;  %p80_p2 = scmp.eq.s32.totalorder %s1122_s13, 1 }
   0x7   : > { %p85_p3 = scmp.ne.s32.totalorder %s1073_s10, %s1069_s9  ;;  %p86_p4 = scmp.eq.s32.totalorder %s820_s14, 1 }
   0x8   : > { %s1137_s18 = scalar_select %p67_p1, %s1077_s11, %s69_s16  }
   0x9   : > { %p1139_p5 = por %p80_p2, %p79_p0  ;;  %p1143_p6 = por %p86_p4, %p85_p3 }
   0xa   : > { %p823_p7 = scmp.ge.s32.totalorder %s1081_s12, 1  ;;  %p115_p8 = scmp.lt.s32.totalorder %s1081_s12, 3 }
   0xc   : > { %p116_p9 = pnand %p823_p7, %p115_p8 }
   0xd   : > { %v174_v0 = vld [vmem:[%s1589_s1] sm:$0xff] (!%p116_p9)  ;;  %v175_v1 = vld [vmem:[%s1589_s1 + $0x8] sm:$0xff] (!%p116_p9)  ;;  %v176_v2 = vld [vmem:[%s1589_s1 + $0x10] sm:$0xff] (!%p116_p9)  ;;  %p137_p10 = scmp.lt.s32.totalorder (!%p116_p9), %s1122_s13, 1  ;;  %vm179_vm0 = vcmask (!%p116_p9), 293888   ;;  %vm276_vm1 = vcmask (!%p116_p9), 1043456  }
   0xe   : > { %119 = sbr.rel (%p116_p9) target bundleno = 457 (0x1c9), region = 28  ;;  %v962_v3 = vpack.c.bf16 (!%p116_p9), %v175_v1, %v174_v0  ;;  %v177_v4 = vld [vmem:[%s1589_s1 + $0x18] sm:$0xff] (!%p116_p9)  ;;  %v178_v6 = vld [vmem:[%s1589_s1 + $0x20] sm:$0xf] (!%p116_p9)  ;;  %s134_s8 = sand.u32 (!%p116_p9), 1, %s1073_s10  }
   0xf   : > { %v966_v5 = vpack.c.bf16 (!%p116_p9), %v177_v4, %v176_v2  ;;  %s824_s14 = sshll.u32 (!%p116_p9), %s134_s8, 8  ;;  %s866_s17 = sshll.u32 (!%p116_p9), %s1122_s13, 12 }
  0x10   : > { %963 = vmatprep.subr.bf16.mxu0 (!%p116_p9), %v962_v3  ;;  %970 = vmatprep.subr.bf16.mxu1 (!%p116_p9), %v962_v3  ;;  %s1449_s16 = scalar_lea.vmem (!%p116_p9), [#allocation2], %s824_s14  ;;  %s1525_s23 = scalar_lea.hbm (!%p116_p9), %s1590_s2, %s866_s17 }
  0x11   : > { %965 = vmatpush3.bf16.msra.mxu0 (!%p116_p9), %v962_v3  ;;  %973 = vmatpush3.bf16.msra.mxu1 (!%p116_p9), %v962_v3  ;;  %s758_s21 = sshll.u32 (!%p116_p9), %s1449_s16, 4  ;;  %s1547_s24 = scalar_lea.sflag (!%p116_p9), [#allocation3], %s134_s8  ;;  %s1527_s21 = int_to_ptr.vmem [resolvable:$true] %s758_s21 }
  0x12   : > { %967 = vmatprep.subr.bf16.mxu0 (!%p116_p9), %v966_v5  ;;  %971 = vmatprep.subr.bf16.mxu1 (!%p116_p9), %v966_v5  ;;  %s1019_s25 = scalar_lea.vmem (!%p116_p9), %s1527_s21, 4096  ;;  %s1083_s26 = smov (!%p116_p9), [#allocation2]  }
  0x13   : > { %p1020_p11 = scmp.ne.s32.totalorder (!%p116_p9), %s1527_s21, %s1019_s25  ;;  %s1023_s27 = sshll.u32 (!%p116_p9), %s1083_s26, 4  ;;  %s1024_s27 = int_to_ptr.vmem [resolvable:$false] %s1023_s27 }
  0x14   : > { %s1025_s28 = scalar_lea.vmem (!%p116_p9), %s1024_s27, 8192  ;;  %p1026_p0 = scmp.lt.s32.totalorder (!%p116_p9), %s1527_s21, %s1024_s27 }
  0x15   : > { %s138_s29 = scalar_select %p137_p10, %s1122_s13, 1  ;;  %969 = vmatpush3.bf16.msra.mxu0 %v966_v5  ;;  %974 = vmatpush3.bf16.msra.mxu1 %v966_v5 }
  0x16   : > { %912 = vmatprep.subr.msk.mxu0 %vm276_vm1, %v178_v6  ;;  %972 = vmatprep.subr.msk.mxu1 %vm276_vm1, %v178_v6  ;;  %p1021_p12 = pnand %p1020_p11, %p1139_p5  ;;  %p1027_p1 = scmp.lt.s32.totalorder %s1025_s28, %s1019_s25 }
  0x17   : > { %s865_s30 = sshll.u32 %s138_s29, 8 }
  0x18   : > { %s1166_s5 = scalar_lea.vmem %s1588_s0, %s865_s30  ;;  %p1022_p13 = pneg %p1021_p12 }
  0x19   : > { %v142_v7 = vld [vmem:[%s1166_s5] sm:$0xff]  ;;  %v143_v8 = vld [vmem:[%s1166_s5 + $0x8] sm:$0xff]  ;;  %v144_v9 = vld [vmem:[%s1166_s5 + $0x10] sm:$0xff]  ;;  %913 = vmatpush3.msk.msra.mxu0 %vm276_vm1, %v178_v6  ;;  %975 = vmatpush3.msk.msra.mxu1 %vm276_vm1, %v178_v6  ;;  %p1028_p2 = por %p1027_p1, %p1026_p0 }
  0x1a   : > { %914 = vmatprep.mubr.msk.f32.mxu0 %vm179_vm0, %v142_v7  ;;  %v158_v10 = vld [vmem:[%s1166_s5 + $0x80] sm:$0xff]  ;;  %v159_v11 = vld [vmem:[%s1166_s5 + $0x88] sm:$0xff]  ;;  %v160_v12 = vld [vmem:[%s1166_s5 + $0x90] sm:$0xff] }
  0x1b   : > { %915 = vmatmul.mubr.msk.f32.vlgmr.msra.gmra.mrb[0].mxu0 %vm179_vm0, %v143_v8  ;;  %938 = vmatprep.mubr.msk.f32.mxu1 %vm179_vm0, %v158_v10  ;;  %v145_v13 = vld [vmem:[%s1166_s5 + $0x18] sm:$0xff]  ;;  %v146_v14 = vld [vmem:[%s1166_s5 + $0x20] sm:$0xff]  ;;  %v147_v17 = vld [vmem:[%s1166_s5 + $0x28] sm:$0xff]  ;;  %p1029_p3 = pnand %p1028_p2, %p1022_p13 }
  0x1c   : > { %917 = vmatprep.mubr.msk.f32.mxu0 %vm179_vm0, %v144_v9  ;;  %939 = vmatmul.mubr.msk.f32.vlgmr.msra.gmra.mrb[0].mxu1 %vm179_vm0, %v159_v11  ;;  %v161_v15 = vld [vmem:[%s1166_s5 + $0x98] sm:$0xff]  ;;  %v162_v16 = vld [vmem:[%s1166_s5 + $0xa0] sm:$0xff]  ;;  %v148_v18 = vld [vmem:[%s1166_s5 + $0x30] sm:$0xff] }
  0x1d   : > { %941 = vmatprep.mubr.msk.f32.mxu1 %vm179_vm0, %v160_v12  ;;  %v163_v19 = vld [vmem:[%s1166_s5 + $0xa8] sm:$0xff]  ;;  %v164_v20 = vld [vmem:[%s1166_s5 + $0xb0] sm:$0xff]  ;;  %v149_v21 = vld [vmem:[%s1166_s5 + $0x38] sm:$0xff] }
  0x1e   : > { %v150_v22 = vld [vmem:[%s1166_s5 + $0x40] sm:$0xff]  ;;  %v165_v23 = vld [vmem:[%s1166_s5 + $0xb8] sm:$0xff]  ;;  %v151_v25 = vld [vmem:[%s1166_s5 + $0x48] sm:$0xff] }
  0x1f   : > { %918 = vmatmul.mubr.msk.f32.gmra.mrb[2].mxu0 %vm179_vm0, %v145_v13  ;;  %v166_v24 = vld [vmem:[%s1166_s5 + $0xc0] sm:$0xff]  ;;  %v152_v26 = vld [vmem:[%s1166_s5 + $0x50] sm:$0xff]  ;;  %v167_v27 = vld [vmem:[%s1166_s5 + $0xc8] sm:$0xff] }
  0x20   : > { %920 = vmatprep.mubr.msk.f32.mxu0 %vm179_vm0, %v146_v14  ;;  %942 = vmatmul.mubr.msk.f32.gmra.mrb[2].mxu1 %vm179_vm0, %v161_v15  ;;  %v168_v28 = vld [vmem:[%s1166_s5 + $0xd0] sm:$0xff]  ;;  %v153_v29 = vld [vmem:[%s1166_s5 + $0x58] sm:$0xff]  ;;  %v154_v30 = vld [vmem:[%s1166_s5 + $0x60] sm:$0xff] }
  0x21   : > { %944 = vmatprep.mubr.msk.f32.mxu1 %vm179_vm0, %v162_v16  ;;  %v169_v31 = vld [vmem:[%s1166_s5 + $0xd8] sm:$0xff]  ;;  %v170_v32 = vld [vmem:[%s1166_s5 + $0xe0] sm:$0xff]  ;;  %v155_v33 = vld [vmem:[%s1166_s5 + $0x68] sm:$0xff] }
  0x22   : > { %v156_v34 = vld [vmem:[%s1166_s5 + $0x70] sm:$0xff]  ;;  %v171_v35 = vld [vmem:[%s1166_s5 + $0xe8] sm:$0xff]  ;;  %v157_v37 = vld [vmem:[%s1166_s5 + $0x78] sm:$0xff] }
  0x23   : > { %921 = vmatmul.mubr.msk.f32.gmra.mrb[4].mxu0 %vm179_vm0, %v147_v17  ;;  %v172_v36 = vld [vmem:[%s1166_s5 + $0xf0] sm:$0xff]  ;;  %v173_v38 = vld [vmem:[%s1166_s5 + $0xf8] sm:$0xff] }
  0x24   : > { %923 = vmatprep.mubr.msk.f32.mxu0 %vm179_vm0, %v148_v18  ;;  %945 = vmatmul.mubr.msk.f32.gmra.mrb[4].mxu1 %vm179_vm0, %v163_v19 }
  0x25   : > { %947 = vmatprep.mubr.msk.f32.mxu1 %vm179_vm0, %v164_v20 }
  0x27   : > { %924 = vmatmul.mubr.msk.f32.gmra.mrb[6].mxu0 %vm179_vm0, %v149_v21 }
  0x28   : > { %926 = vmatprep.mubr.msk.f32.mxu0 %vm179_vm0, %v150_v22  ;;  %948 = vmatmul.mubr.msk.f32.gmra.mrb[6].mxu1 %vm179_vm0, %v165_v23 }
  0x29   : > { %950 = vmatprep.mubr.msk.f32.mxu1 %vm179_vm0, %v166_v24 }
  0x2b   : > { %927 = vmatmul.mubr.msk.f32.gmra.mrb[8].mxu0 %vm179_vm0, %v151_v25 }
  0x2c   : > { %929 = vmatprep.mubr.msk.f32.mxu0 %vm179_vm0, %v152_v26  ;;  %951 = vmatmul.mubr.msk.f32.gmra.mrb[8].mxu1 %vm179_vm0, %v167_v27 }
  0x2d   : > { %953 = vmatprep.mubr.msk.f32.mxu1 %vm179_vm0, %v168_v28 }
  0x2f   : > { %930 = vmatmul.mubr.msk.f32.gmra.mrb[10].mxu0 %vm179_vm0, %v153_v29 }
  0x30   : > { %932 = vmatprep.mubr.msk.f32.mxu0 %vm179_vm0, %v154_v30  ;;  %954 = vmatmul.mubr.msk.f32.gmra.mrb[10].mxu1 %vm179_vm0, %v169_v31 }
  0x31   : > { %956 = vmatprep.mubr.msk.f32.mxu1 %vm179_vm0, %v170_v32 }
  0x33   : > { %933 = vmatmul.mubr.msk.f32.gmra.mrb[12].mxu0 %vm179_vm0, %v155_v33 }
  0x34   : > { %935 = vmatprep.mubr.msk.f32.mxu0 %vm179_vm0, %v156_v34  ;;  %957 = vmatmul.mubr.msk.f32.gmra.mrb[12].mxu1 %vm179_vm0, %v171_v35 }
  0x35   : > { %959 = vmatprep.mubr.msk.f32.mxu1 %vm179_vm0, %v172_v36 }
  0x37   : > { %936 = vmatmul.mubr.msk.f32.gmra.mrb[14].mxu0 %vm179_vm0, %v157_v37 }
  0x38   : > { %960 = vmatmul.mubr.msk.f32.gmra.mrb[14].mxu1 %vm179_vm0, %v173_v38 }
  0xee   : > { %v1235_v39 = vpop.f32.mrb[0].mxu0 }
  0xef   : > { %v1237_v40 = vpop.f32.mrb[1].mxu0  ;;  %v1239_v41 = vpop.f32.mrb[0].mxu1 }
  0xf0   : > { %v505_v42 = vadd.f32 %v1235_v39, %v1237_v40  ;;  %v1243_v43 = vpop.f32.mrb[1].mxu1 }
  0xf2   : > { %v1245_v44 = vpop.f32.mrb[2].mxu0 }
  0xf3   : > { %v1247_v45 = vpop.f32.mrb[3].mxu0  ;;  %v1249_v46 = vpop.f32.mrb[2].mxu1 }
  0xf4   : > { %v506_v47 = vadd.f32 %v505_v42, %v1247_v45  ;;  %v1252_v48 = vpop.f32.mrb[3].mxu1 }
  0xf6   : > { %v1254_v49 = vpop.f32.mrb[4].mxu0  ;;  %v507_v50 = vadd.f32 %v1245_v44, %v506_v47 }
  0xf7   : > { %v366_v51 = vpop.f32.mrb[5].mxu0  ;;  %v1257_v52 = vpop.f32.mrb[4].mxu1 }
  0xf8   : > { %v508_v53 = vadd.f32 %v507_v50, %v366_v51  ;;  %v1259_v54 = vpop.f32.mrb[5].mxu1 }
  0xfa   : > { %v925_v55 = vpop.f32.mrb[6].mxu0  ;;  %v509_v56 = vadd.f32 %v1254_v49, %v508_v53 }
  0xfb   : > { %v376_v57 = vpop.f32.mrb[7].mxu0  ;;  %v1262_v58 = vpop.f32.mrb[6].mxu1 }
  0xfc   : > { %v510_v59 = vadd.f32 %v509_v56, %v376_v57  ;;  %v1264_v60 = vpop.f32.mrb[7].mxu1 }
  0xfe   : > { %v928_v61 = vpop.f32.mrb[8].mxu0  ;;  %v511_v62 = vadd.f32 %v925_v55, %v510_v59 }
  0xff   : > { %v386_v63 = vpop.f32.mrb[9].mxu0  ;;  %v1266_v0 = vpop.f32.mrb[8].mxu1 }
 0x100   : > { %v512_v1 = vadd.f32 %v511_v62, %v386_v63  ;;  %v1268_v2 = vpop.f32.mrb[9].mxu1 }
 0x102   : > { %v931_v3 = vpop.f32.mrb[10].mxu0  ;;  %v513_v4 = vadd.f32 %v928_v61, %v512_v1 }
 0x103   : > { %v396_v5 = vpop.f32.mrb[11].mxu0  ;;  %v1270_v6 = vpop.f32.mrb[10].mxu1 }
 0x104   : > { %v514_v7 = vadd.f32 %v513_v4, %v396_v5  ;;  %v1272_v8 = vpop.f32.mrb[11].mxu1 }
 0x106   : > { %v934_v9 = vpop.f32.mrb[12].mxu0  ;;  %v515_v10 = vadd.f32 %v931_v3, %v514_v7 }
 0x107   : > { %v406_v11 = vpop.f32.mrb[13].mxu0  ;;  %v958_v12 = vpop.f32.mrb[12].mxu1 }
 0x108   : > { %v516_v13 = vadd.f32 %v515_v10, %v406_v11  ;;  %v486_v14 = vpop.f32.mrb[13].mxu1 }
 0x10a   : > { %v937_v15 = vpop.f32.mrb[14].mxu0  ;;  %v517_v16 = vadd.f32 %v934_v9, %v516_v13 }
 0x10b   : > { %v416_v17 = vpop.f32.mrb[15].mxu0  ;;  %v961_v18 = vpop.f32.mrb[14].mxu1 }
 0x10c   : > { %v518_v19 = vadd.f32 %v517_v16, %v416_v17  ;;  %v496_v20 = vpop.f32.mrb[15].mxu1 }
 0x10e   : > { %v519_v21 = vadd.f32 %v937_v15, %v518_v19 }
 0x110   : > { %v520_v22 = vadd.f32 %v519_v21, %v1243_v43 }
 0x112   : > { %v521_v23 = vadd.f32 %v1239_v41, %v520_v22 }
 0x114   : > { %v522_v24 = vadd.f32 %v521_v23, %v1252_v48 }
 0x116   : > { %v523_v25 = vadd.f32 %v1249_v46, %v522_v24 }
 0x118   : > { %v524_v26 = vadd.f32 %v523_v25, %v1259_v54 }
 0x11a   : > { %v525_v27 = vadd.f32 %v1257_v52, %v524_v26 }
 0x11c   : > { %v526_v28 = vadd.f32 %v525_v27, %v1264_v60 }
 0x11e   : > { %v527_v29 = vadd.f32 %v1262_v58, %v526_v28 }
 0x120   : > { %v528_v30 = vadd.f32 %v527_v29, %v1268_v2 }
 0x122   : > { %v529_v31 = vadd.f32 %v1266_v0, %v528_v30 }
 0x124   : > { %v530_v32 = vadd.f32 %v529_v31, %v1272_v8 }
 0x126   : > { %v531_v33 = vadd.f32 %v1270_v6, %v530_v32 }
 0x128   : > { %v532_v34 = vadd.f32 %v531_v33, %v486_v14 }
 0x12a   : > { %v533_v35 = vadd.f32 %v958_v12, %v532_v34 }
 0x12c   : > { %v534_v36 = vadd.f32 %v533_v35, %v496_v20 }
 0x12e   : > { %v535_v37 = vadd.f32 %v961_v18, %v534_v36 }
 0x130   : > { %v536_v38 = vrot.slane %v535_v37, 4 }
 0x132   : > { %v537_v42 = vadd.f32 %v536_v38, %v535_v37 }
 0x134   : > { %v538_v47 = vrot.slane %v537_v42, 2 }
 0x136   : > { %v539_v50 = vadd.f32 %v538_v47, %v537_v42 }
 0x138   : > { %v540_v53 = vrot.slane %v539_v50, 1 }
 0x13a   : > { %v541_v56 = vadd.f32 %v540_v53, %v539_v50 }
 0x13c   : > { %v543_v59 = vmul.f32 0.00390625, %v541_v56 }
 0x13e   : > { %v1287_v62 = vsub.f32 %v1237_v40, %v543_v59  ;;  %v1290_v1 = vsub.f32 %v1235_v39, %v543_v59  ;;  %v1293_v4 = vsub.f32 %v1247_v45, %v543_v59  ;;  %v1296_v7 = vsub.f32 %v1245_v44, %v543_v59 }
 0x13f   : > { %v1298_v10 = vsub.f32 %v366_v51, %v543_v59  ;;  %v1301_v13 = vsub.f32 %v1254_v49, %v543_v59  ;;  %v1303_v16 = vsub.f32 %v376_v57, %v543_v59  ;;  %v1305_v19 = vsub.f32 %v925_v55, %v543_v59 }
 0x140   : > { %v1307_v40 = vsub.f32 %v386_v63, %v543_v59  ;;  %v1309_v21 = vsub.f32 %v928_v61, %v543_v59  ;;  %v1311_v39 = vsub.f32 %v396_v5, %v543_v59  ;;  %v1313_v45 = vsub.f32 %v931_v3, %v543_v59 }
 0x141   : > { %v1315_v22 = vsub.f32 %v406_v11, %v543_v59  ;;  %v1317_v44 = vsub.f32 %v934_v9, %v543_v59  ;;  %v1319_v51 = vsub.f32 %v416_v17, %v543_v59  ;;  %v1321_v49 = vsub.f32 %v937_v15, %v543_v59 }
 0x142   : > { %v1324_v57 = vsub.f32 %v1243_v43, %v543_v59  ;;  %v1327_v55 = vsub.f32 %v1239_v41, %v543_v59  ;;  %v1330_v61 = vsub.f32 %v1252_v48, %v543_v59  ;;  %v1333_v63 = vsub.f32 %v1249_v46, %v543_v59 }
 0x143   : > { %v1336_v3 = vsub.f32 %v1259_v54, %v543_v59  ;;  %v1339_v5 = vsub.f32 %v1257_v52, %v543_v59  ;;  %v1342_v9 = vsub.f32 %v1264_v60, %v543_v59  ;;  %v1345_v43 = vsub.f32 %v1262_v58, %v543_v59 }
 0x144   : > { %v1348_v41 = vsub.f32 %v1268_v2, %v543_v59  ;;  %v1351_v48 = vsub.f32 %v1266_v0, %v543_v59  ;;  %v1354_v46 = vsub.f32 %v1272_v8, %v543_v59  ;;  %v1357_v54 = vsub.f32 %v1270_v6, %v543_v59 }
 0x145   : > { %v1359_v52 = vsub.f32 %v486_v14, %v543_v59  ;;  %v1361_v11 = vsub.f32 %v958_v12, %v543_v59  ;;  %v1363_v60 = vsub.f32 %v496_v20, %v543_v59  ;;  %v1365_v58 = vsub.f32 %v961_v18, %v543_v59 }
 0x146   : > { %v576_v2 = vmul.f32 %v1287_v62, %v1287_v62  ;;  %v577_v0 = vmul.f32 %v1290_v1, %v1290_v1  ;;  %v578_v8 = vmul.f32 %v1293_v4, %v1293_v4  ;;  %v579_v6 = vmul.f32 %v1296_v7, %v1296_v7 }
 0x147   : > { %v580_v12 = vmul.f32 %v1298_v10, %v1298_v10  ;;  %v581_v18 = vmul.f32 %v1301_v13, %v1301_v13  ;;  %v582_v23 = vmul.f32 %v1303_v16, %v1303_v16  ;;  %v583_v25 = vmul.f32 %v1305_v19, %v1305_v19 }
 0x148   : > { %v608_v15 = vadd.f32 %v577_v0, %v576_v2  ;;  %v584_v27 = vmul.f32 %v1307_v40, %v1307_v40  ;;  %v585_v29 = vmul.f32 %v1309_v21, %v1309_v21  ;;  %v586_v31 = vmul.f32 %v1311_v39, %v1311_v39 }
 0x149   : > { %v587_v33 = vmul.f32 %v1313_v45, %v1313_v45  ;;  %v588_v35 = vmul.f32 %v1315_v22, %v1315_v22  ;;  %v589_v37 = vmul.f32 %v1317_v44, %v1317_v44  ;;  %v590_v42 = vmul.f32 %v1319_v51, %v1319_v51 }
 0x14a   : > { %v609_v14 = vadd.f32 %v608_v15, %v578_v8  ;;  %v591_v50 = vmul.f32 %v1321_v49, %v1321_v49  ;;  %v592_v56 = vmul.f32 %v1324_v57, %v1324_v57  ;;  %v593_v2 = vmul.f32 %v1327_v55, %v1327_v55 }
 0x14b   : > { %v594_v8 = vmul.f32 %v1330_v61, %v1330_v61 }
 0x14c   : > { %v610_v17 = vadd.f32 %v609_v14, %v579_v6  ;;  %v595_v6 = vmul.f32 %v1333_v63, %v1333_v63 }
 0x14e   : > { %v611_v20 = vadd.f32 %v610_v17, %v580_v12  ;;  %v596_v12 = vmul.f32 %v1336_v3, %v1336_v3 }
 0x150   : > { %v612_v24 = vadd.f32 %v611_v20, %v581_v18  ;;  %v597_v18 = vmul.f32 %v1339_v5, %v1339_v5 }
 0x152   : > { %v613_v26 = vadd.f32 %v612_v24, %v582_v23  ;;  %v598_v23 = vmul.f32 %v1342_v9, %v1342_v9 }
 0x154   : > { %v614_v28 = vadd.f32 %v613_v26, %v583_v25  ;;  %v599_v25 = vmul.f32 %v1345_v43, %v1345_v43 }
 0x156   : > { %v615_v30 = vadd.f32 %v614_v28, %v584_v27  ;;  %v600_v27 = vmul.f32 %v1348_v41, %v1348_v41 }
 0x158   : > { %v616_v32 = vadd.f32 %v615_v30, %v585_v29  ;;  %v601_v29 = vmul.f32 %v1351_v48, %v1351_v48 }
 0x15a   : > { %v617_v34 = vadd.f32 %v616_v32, %v586_v31  ;;  %v602_v31 = vmul.f32 %v1354_v46, %v1354_v46 }
 0x15c   : > { %v618_v36 = vadd.f32 %v617_v34, %v587_v33  ;;  %v603_v33 = vmul.f32 %v1357_v54, %v1357_v54 }
 0x15e   : > { %v619_v38 = vadd.f32 %v618_v36, %v588_v35  ;;  %v604_v35 = vmul.f32 %v1359_v52, %v1359_v52 }
 0x160   : > { %v620_v47 = vadd.f32 %v619_v38, %v589_v37  ;;  %v605_v37 = vmul.f32 %v1361_v11, %v1361_v11 }
 0x162   : > { %v621_v53 = vadd.f32 %v620_v47, %v590_v42  ;;  %v606_v42 = vmul.f32 %v1363_v60, %v1363_v60 }
 0x164   : > { %v622_v59 = vadd.f32 %v621_v53, %v591_v50  ;;  %v607_v50 = vmul.f32 %v1365_v58, %v1365_v58 }
 0x166   : > { %v623_v0 = vadd.f32 %v622_v59, %v592_v56 }
 0x168   : > { %v624_v15 = vadd.f32 %v623_v0, %v593_v2 }
 0x16a   : > { %v625_v14 = vadd.f32 %v624_v15, %v594_v8 }
 0x16c   : > { %v626_v17 = vadd.f32 %v625_v14, %v595_v6 }
 0x16e   : > { %v627_v20 = vadd.f32 %v626_v17, %v596_v12 }
 0x170   : > { %v628_v24 = vadd.f32 %v627_v20, %v597_v18 }
 0x172   : > { %v629_v26 = vadd.f32 %v628_v24, %v598_v23 }
 0x174   : > { %v630_v28 = vadd.f32 %v629_v26, %v599_v25 }
 0x176   : > { %v631_v30 = vadd.f32 %v630_v28, %v600_v27 }
 0x178   : > { %v632_v32 = vadd.f32 %v631_v30, %v601_v29 }
 0x17a   : > { %v633_v34 = vadd.f32 %v632_v32, %v602_v31 }
 0x17c   : > { %v634_v36 = vadd.f32 %v633_v34, %v603_v33 }
 0x17e   : > { %v635_v38 = vadd.f32 %v634_v36, %v604_v35 }
 0x180   : > { %v636_v47 = vadd.f32 %v635_v38, %v605_v37 }
 0x182   : > { %v637_v53 = vadd.f32 %v636_v47, %v606_v42 }
 0x184   : > { %v638_v56 = vadd.f32 %v637_v53, %v607_v50 }
 0x186   : > { %v639_v59 = vrot.slane %v638_v56, 4 }
 0x188   : > { %v640_v2 = vadd.f32 %v639_v59, %v638_v56 }
 0x18a   : > { %v641_v0 = vrot.slane %v640_v2, 2 }
 0x18c   : > { %v642_v8 = vadd.f32 %v641_v0, %v640_v2 }
 0x18e   : > { %v643_v15 = vrot.slane %v642_v8, 1 }
 0x190   : > { %v644_v6 = vadd.f32 %v643_v15, %v642_v8 }
 0x192   : > { %v645_v14 = vmul.f32 0.00390625, %v644_v6 }
 0x194   : > { %v646_v12 = vadd.f32 1e-05, %v645_v14 }
 0x196   : > { %1017 = vrsqrt.f32 %v646_v12 }
 0x1a0   : > { %v1018_v17 = vpop.eup %1017 }
 0x1a1   : > { %v678_v18 = vmul.f32 %v1018_v17, %v1363_v60  ;;  %v648_v20 = vmul.f32 %v1018_v17, %v1287_v62  ;;  %v649_v23 = vmul.f32 %v1018_v17, %v1290_v1  ;;  %v650_v24 = vmul.f32 %v1018_v17, %v1293_v4 }
 0x1a2   : > { %v651_v25 = vmul.f32 %v1018_v17, %v1296_v7  ;;  %v652_v26 = vmul.f32 %v1018_v17, %v1298_v10  ;;  %v653_v27 = vmul.f32 %v1018_v17, %v1301_v13  ;;  %v654_v28 = vmul.f32 %v1018_v17, %v1303_v16 }
 0x1a3   : > { %v710_v29 = vmax.f32 %v678_v18, 0.0  ;;  %v655_v30 = vmul.f32 %v1018_v17, %v1305_v19  ;;  %v656_v31 = vmul.f32 %v1018_v17, %v1307_v40  ;;  %v657_v60 = vmul.f32 %v1018_v17, %v1309_v21 }
 0x1a4   : > { %v658_v62 = vmul.f32 %v1018_v17, %v1311_v39  ;;  %v659_v1 = vmul.f32 %v1018_v17, %v1313_v45  ;;  %v660_v4 = vmul.f32 %v1018_v17, %v1315_v22  ;;  %v661_v7 = vmul.f32 %v1018_v17, %v1317_v44 }
 0x1a5   : > { %742 = vst [vmem:[%s1449_s16 + $0xf0] sm:$0xff] %v710_v29  ;;  %v662_v10 = vmul.f32 %v1018_v17, %v1319_v51  ;;  %v663_v13 = vmul.f32 %v1018_v17, %v1321_v49  ;;  %v664_v16 = vmul.f32 %v1018_v17, %v1324_v57  ;;  %v665_v19 = vmul.f32 %v1018_v17, %v1327_v55 }
 0x1a6   : > { %v666_v40 = vmul.f32 %v1018_v17, %v1330_v61  ;;  %v1458_v21 = vmul.f32 %v1018_v17, %v1333_v63  ;;  %v1461_v39 = vmul.f32 %v1018_v17, %v1336_v3  ;;  %v1464_v45 = vmul.f32 %v1018_v17, %v1339_v5 }
 0x1a7   : > { %v1467_v22 = vmul.f32 %v1018_v17, %v1342_v9  ;;  %v1470_v44 = vmul.f32 %v1018_v17, %v1345_v43  ;;  %v1473_v51 = vmul.f32 %v1018_v17, %v1348_v41  ;;  %v1476_v49 = vmul.f32 %v1018_v17, %v1351_v48 }
 0x1a8   : > { %v1479_v57 = vmul.f32 %v1018_v17, %v1354_v46  ;;  %v1482_v55 = vmul.f32 %v1018_v17, %v1357_v54  ;;  %v1485_v61 = vmul.f32 %v1018_v17, %v1359_v52  ;;  %v1488_v63 = vmul.f32 %v1018_v17, %v1361_v11 }
 0x1a9   : > { %v1491_v3 = vmul.f32 %v1018_v17, %v1365_v58  ;;  %v680_v5 = vmax.f32 %v648_v20, 0.0  ;;  %v681_v9 = vmax.f32 %v649_v23, 0.0  ;;  %v682_v43 = vmax.f32 %v650_v24, 0.0 }
 0x1aa   : > { %v683_v41 = vmax.f32 %v651_v25, 0.0  ;;  %v684_v48 = vmax.f32 %v652_v26, 0.0  ;;  %v685_v46 = vmax.f32 %v653_v27, 0.0  ;;  %v686_v54 = vmax.f32 %v654_v28, 0.0 }
 0x1ab   : > { %v687_v52 = vmax.f32 %v655_v30, 0.0  ;;  %v688_v32 = vmax.f32 %v656_v31, 0.0  ;;  %v689_v11 = vmax.f32 %v657_v60, 0.0  ;;  %v690_v33 = vmax.f32 %v658_v62, 0.0  ;;  %712 = vst [vmem:[%s1449_s16] sm:$0xff] %v680_v5  ;;  %713 = vst [vmem:[%s1449_s16 + $0x8] sm:$0xff] %v681_v9 }
 0x1ac   : > { %714 = vst [vmem:[%s1449_s16 + $0x10] sm:$0xff] %v682_v43  ;;  %v691_v58 = vmax.f32 %v659_v1, 0.0  ;;  %v692_v34 = vmax.f32 %v660_v4, 0.0  ;;  %v693_v35 = vmax.f32 %v661_v7, 0.0  ;;  %v694_v36 = vmax.f32 %v662_v10, 0.0  ;;  %715 = vst [vmem:[%s1449_s16 + $0x18] sm:$0xff] %v683_v41 }
 0x1ad   : > { %716 = vst [vmem:[%s1449_s16 + $0x20] sm:$0xff] %v684_v48  ;;  %717 = vst [vmem:[%s1449_s16 + $0x28] sm:$0xff] %v685_v46  ;;  %v695_v37 = vmax.f32 %v663_v13, 0.0  ;;  %v696_v38 = vmax.f32 %v664_v16, 0.0  ;;  %v697_v42 = vmax.f32 %v665_v19, 0.0  ;;  %v698_v47 = vmax.f32 %v666_v40, 0.0 }
 0x1ae   : > { %718 = vst [vmem:[%s1449_s16 + $0x30] sm:$0xff] %v686_v54  ;;  %719 = vst [vmem:[%s1449_s16 + $0x38] sm:$0xff] %v687_v52  ;;  %v699_v50 = vmax.f32 %v1458_v21, 0.0  ;;  %v700_v53 = vmax.f32 %v1461_v39, 0.0  ;;  %v701_v56 = vmax.f32 %v1464_v45, 0.0  ;;  %v702_v59 = vmax.f32 %v1467_v22, 0.0 }
 0x1af   : > { %720 = vst [vmem:[%s1449_s16 + $0x40] sm:$0xff] %v688_v32  ;;  %721 = vst [vmem:[%s1449_s16 + $0x48] sm:$0xff] %v689_v11  ;;  %v703_v2 = vmax.f32 %v1470_v44, 0.0  ;;  %v704_v0 = vmax.f32 %v1473_v51, 0.0  ;;  %v705_v8 = vmax.f32 %v1476_v49, 0.0  ;;  %v706_v15 = vmax.f32 %v1479_v57, 0.0 }
 0x1b0   : > { %722 = vst [vmem:[%s1449_s16 + $0x50] sm:$0xff] %v690_v33  ;;  %723 = vst [vmem:[%s1449_s16 + $0x58] sm:$0xff] %v691_v58  ;;  %v707_v6 = vmax.f32 %v1482_v55, 0.0  ;;  %v708_v14 = vmax.f32 %v1485_v61, 0.0  ;;  %v709_v12 = vmax.f32 %v1488_v63, 0.0  ;;  %v711_v17 = vmax.f32 %v1491_v3, 0.0 }
 0x1b1   : > { %724 = vst [vmem:[%s1449_s16 + $0x60] sm:$0xff] %v692_v34  ;;  %725 = vst [vmem:[%s1449_s16 + $0x68] sm:$0xff] %v693_v35 }
 0x1b2   : > { %726 = vst [vmem:[%s1449_s16 + $0x70] sm:$0xff] %v694_v36  ;;  %727 = vst [vmem:[%s1449_s16 + $0x78] sm:$0xff] %v695_v37 }
 0x1b3   : > { %728 = vst [vmem:[%s1449_s16 + $0x80] sm:$0xff] %v696_v38  ;;  %729 = vst [vmem:[%s1449_s16 + $0x88] sm:$0xff] %v697_v42 }
 0x1b4   : > { %730 = vst [vmem:[%s1449_s16 + $0x90] sm:$0xff] %v698_v47  ;;  %731 = vst [vmem:[%s1449_s16 + $0x98] sm:$0xff] %v699_v50 }
 0x1b5   : > { %732 = vst [vmem:[%s1449_s16 + $0xa0] sm:$0xff] %v700_v53  ;;  %733 = vst [vmem:[%s1449_s16 + $0xa8] sm:$0xff] %v701_v56 }
 0x1b6   : > { %734 = vst [vmem:[%s1449_s16 + $0xb0] sm:$0xff] %v702_v59  ;;  %735 = vst [vmem:[%s1449_s16 + $0xb8] sm:$0xff] %v703_v2 }
 0x1b7   : > { %736 = vst [vmem:[%s1449_s16 + $0xc0] sm:$0xff] %v704_v0  ;;  %737 = vst [vmem:[%s1449_s16 + $0xc8] sm:$0xff] %v705_v8 }
 0x1b8   : > { %738 = vst [vmem:[%s1449_s16 + $0xd0] sm:$0xff] %v706_v15  ;;  %739 = vst [vmem:[%s1449_s16 + $0xd8] sm:$0xff] %v707_v6 }
 0x1b9   : > { %740 = vst [vmem:[%s1449_s16 + $0xe0] sm:$0xff] %v708_v14  ;;  %741 = vst [vmem:[%s1449_s16 + $0xe8] sm:$0xff] %v709_v12 }
 0x1ba   : > { %743 = vst [vmem:[%s1449_s16 + $0xf8] sm:$0xff] %v711_v17 }
 0x1bb   : > { %1032 = shalt.err (!%p1029_p3)
}
 0x1bc   : > { %s1033_s29 = scalar_lea.hbm %s1525_s23, 4096  ;;  %s1037_s4 = scalar_lea.hbm %s1590_s2, 8192 }
 0x1bd   : > { %p1034_p4 = scmp.ne.s32.totalorder %s1525_s23, %s1033_s29  ;;  %p1038_p9 = scmp.lt.u32.totalorder %s1525_s23, %s1590_s2 }
 0x1be   : > { %p1039_p10 = scmp.lt.u32.totalorder %s1037_s4, %s1033_s29  ;;  %p1041_p12 = scmp.lt.u32.totalorder %s1033_s29, %s1525_s23 }
 0x1bf   : > { %p1035_p7 = pnand %p1034_p4, %p1139_p5 }
 0x1c0   : > { %p1040_p11 = por %p1039_p10, %p1038_p9 }
 0x1c1   : > { %p1036_p8 = pneg %p1035_p7 }
 0x1c2   : > { %p1042_p13 = por %p1041_p12, %p1040_p11 }
 0x1c4   : > { %p1043_p0 = pnand %p1042_p13, %p1036_p8 }
 0x1c6   : > { %1046 = shalt.err (!%p1043_p0)
}
 0x1c7   : > { %s1084_s7 = smov 128   ;;  %s1085_s8 = smov 8  }
 0x1c8   : > { %976 = dma.vmem_to_hbm [thread:$0]  (%p1139_p5), %s1527_s21, 4096, %s1525_s23, %s1547_s24, %s1084_s7, %s1084_s7, %s1085_s8  }
 0x1c9 PF: > { %p982_p1 = scmp.ge.s32.totalorder %s1081_s12, 2  ;;  %s773_s14 = sand.u32 1, %s1069_s9  }
 0x1ca   : > { %s774_s16 = scalar_lea.sflag [#allocation3], %s773_s14 }
 0x1cb   : > { %p979_p2 = pnand %p982_p1, %p1143_p6 }
 0x1cd   : > { %1064 = dma.done.wait (!%p979_p2), %s774_s16, 4096  }
 0x1ce   : > { %1066 = vsyncadd (!%p979_p2), %s774_s16, 4294963200  ;;  %p12_p3 = scmp.ge.s32.totalorder %s1126_s15, 4   ;;  %s1593_s9 = smov %s1073_s10 }
 0x1cf   : > { %s1594_s10 = smov %s1077_s11  ;;  %s1595_s11 = smov %s1137_s18 }
 0x1d0   : > { %s1596_s12 = smov %s1126_s15  ;;  %14 = sbr.rel (!%p12_p3) target bundleno = 3 (0x3), region = 63 }
 0x1d7   :  { %779 = vsyncpa [#allocation3], 1 }
 0x1d8   :  { %781 = vsyncpa [#allocation3 + $0x1], 1 }

</bundles_post_ra>
